<compile_context>
chip_gen: v6e
topology: v6e:2x2x1
jax: 0.10.0
libtpu: 0.0.40
codegen_flags: <defaults>
</compile_context>

<pallas_src>
import functools

import jax
import jax.numpy as jnp
import numpy as np
from jax.experimental import pallas as pl
from jax.experimental.pallas import tpu as pltpu

_LANE = 128
_SUBLANE = 8


def _round_up(x: int, m: int) -> int:
    return ((x + m - 1) // m) * m


def _tpu_vmem_capacity_bytes() -> int:
    """Best-effort per-core VMEM capacity; conservative (v7x) default."""
    try:
        return int(pltpu.get_tpu_info().vmem_capacity_bytes)
    except Exception:
        return 64 * 2**20


# --------------------------------------------------------------------------- #
# Kernel
# --------------------------------------------------------------------------- #
def _router_kernel(x_ref, wt_ref, o_ref):
    # x_ref:  [tm, d_model]    token tile in its *original* dtype
    # wt_ref: [d_model, E_pad] resident transposed + lane-padded weight
    # o_ref:  [tm, E_pad]      f32 logits tile (lane-dense, unmasked stores)
    #
    # Cast to the compute dtype in-kernel (VPU cast is free under the DMA
    # shadow) so the wrapper never rewrites hidden_states in HBM.
    x = x_ref[...].astype(wt_ref.dtype)
    o_ref[...] = jnp.dot(x, wt_ref[...], preferred_element_type=jnp.float32)


# --------------------------------------------------------------------------- #
# Weight preparation (hoist this out of the per-call path; cache per layer)
# --------------------------------------------------------------------------- #
def prepare_router_weight(weight: jax.Array, compute_dtype=None) -> jax.Array:
    """Linear-layout weight [E, d_model] -> kernel layout [d_model, E_pad].

    Transpose + zero-pad experts to a multiple of 128 lanes + optional dtype
    cast. Call once at model init and reuse the result with
    `dbrx_router_prepared` (the router runs per layer per step).
    """
    num_experts, _ = weight.shape
    if compute_dtype is not None:
        weight = weight.astype(compute_dtype)
    w_t = weight.T  # [d_model, E]
    e_pad = _round_up(num_experts, _LANE)
    if e_pad != num_experts:
        # Padded expert columns produce logit 0.0; they are sliced away before
        # returning. NOTE: any fused top-k on the padded slab must mask them.
        w_t = jnp.pad(w_t, ((0, 0), (0, e_pad - num_experts)))
    return w_t


# --------------------------------------------------------------------------- #
# Tile selection
# --------------------------------------------------------------------------- #
def _choose_token_tile(T, d_model, e_pad, x_bytes, w_bytes, tm_max, vmem_budget):
    """Split T tokens over a balanced number of grid steps.

    Returns (tm, vmem_need_bytes). tm is a multiple of 8 (or == T for a single
    full-extent block), so padding is bounded to < 8 rows per tile and never
    materialized (Mosaic masks the partial edge block).
    """
    t8 = _round_up(max(T, 1), _SUBLANE)
    n = max(1, pl.cdiv(t8, tm_max))
    if n > 1 and n % 2:
        n += 1  # even step count -> balanced work across v7x's 2 TensorCores
    while True:
        tm = _round_up(pl.cdiv(t8, n), _SUBLANE)
        need = (
            2 * tm * d_model * x_bytes      # double-buffered token tiles
            + 2 * d_model * e_pad * w_bytes  # weight (conservative: 2 buffers)
            + 2 * tm * e_pad * 4             # double-buffered f32 output tiles
        )
        if need <= vmem_budget or tm <= _SUBLANE:
            break
        n += 1 if n == 1 else 2
    if tm >= T:
        tm = T  # one full-extent block (valid for any T, including T < 8)
    return tm, need


# --------------------------------------------------------------------------- #
# Pallas path
# --------------------------------------------------------------------------- #
@functools.partial(
    jax.jit,
    static_argnames=("num_experts", "tm", "vmem_limit", "single_buffer_weight"),
)
def _dbrx_router_pallas(
    hidden_states: jax.Array,
    w_t: jax.Array,
    *,
    num_experts: int,
    tm: int,
    vmem_limit: int,
    single_buffer_weight: bool,
) -> jax.Array:
    T, d_model = hidden_states.shape
    d_model_w, e_pad = w_t.shape
    assert d_model == d_model_w
    assert e_pad % _LANE == 0

    grid = (pl.cdiv(T, tm),)

    # Resident weight: constant block index -> a second pipeline buffer is
    # pure VMEM waste. Single-buffer it when the API is available.
    w_spec_kwargs = {}
    if single_buffer_weight and hasattr(pl, "Buffered"):
        w_spec_kwargs["pipeline_mode"] = pl.Buffered(1)
    w_spec = pl.BlockSpec((d_model, e_pad), lambda i: (0, 0), **w_spec_kwargs)

    # Advisory cost hint with *true* (unpadded) sizes.
    cost = pl.CostEstimate(
        flops=2 * T * d_model * num_experts,
        transcendentals=0,
        bytes_accessed=(
            T * d_model * hidden_states.dtype.itemsize
            + d_model * e_pad * w_t.dtype.itemsize
            + T * e_pad * 4
        ),
    )

    logits_padded = pl.pallas_call(
        _router_kernel,
        out_shape=jax.ShapeDtypeStruct((T, e_pad), jnp.float32),
        grid=grid,
        in_specs=[
            # Token tile marches along the grid; full d_model per tile.
            pl.BlockSpec((tm, d_model), lambda i: (i, 0)),
            # Full (transposed, lane-padded) weight resident every step.
            w_spec,
        ],
        out_specs=pl.BlockSpec((tm, e_pad), lambda i: (i, 0)),
        compiler_params=pltpu.CompilerParams(
            dimension_semantics=("parallel",),
            vmem_limit_bytes=vmem_limit,
        ),
        cost_estimate=cost,
    )(hidden_states, w_t)

    # Module contract is [T, num_experts]; a fused top-k consumer could take
    # the padded slab instead and skip this slice (pad logits are 0.0!).
    return logits_padded[:, :num_experts]


# --------------------------------------------------------------------------- #
# Small-T (decode) fallback: plain XLA dot
# --------------------------------------------------------------------------- #
@functools.partial(jax.jit, static_argnames=("num_experts",))
def _dbrx_router_small(hidden_states, w_t, *, num_experts):
    x = hidden_states.astype(w_t.dtype)
    return jnp.dot(x, w_t[:, :num_experts], preferred_element_type=jnp.float32)


# --------------------------------------------------------------------------- #
# Public entry points
# --------------------------------------------------------------------------- #
def dbrx_router_prepared(
    hidden_states: jax.Array,
    w_t: jax.Array,
    *,
    num_experts: int,
    tm_max: int | None = None,
    min_pallas_tokens: int = 64,
) -> jax.Array:
    """Router logits from a pre-prepared weight (see prepare_router_weight)."""
    T, d_model = hidden_states.shape

    # Decode-sized batches: weight reload + pallas_call overhead dominates;
    # let XLA's fused dot handle it.
    if T < min_pallas_tokens:
        return _dbrx_router_small(hidden_states, w_t, num_experts=num_experts)

    vmem_phys = _tpu_vmem_capacity_bytes()
    # Headroom below physical VMEM: 48 MiB on 64-MiB parts (v7x), 96 MiB on
    # 128-MiB parts (v5e / v6e).
    vmem_cap = min(96 * 2**20, (vmem_phys * 3) // 4)
    if tm_max is None:
        tm_max = 1024 if vmem_phys >= 100 * 2**20 else 512

    e_pad = w_t.shape[1]
    tm, need = _choose_token_tile(
        T,
        d_model,
        e_pad,
        hidden_states.dtype.itemsize,
        w_t.dtype.itemsize,
        tm_max,
        (vmem_cap * 2) // 3,
    )
    vmem_limit = int(min(vmem_cap, max(16 * 2**20, (need * 3) // 2)))
    vmem_limit = max(vmem_limit, need)

    try:
        return _dbrx_router_pallas(
            hidden_states,
            w_t,
            num_experts=num_experts,
            tm=tm,
            vmem_limit=vmem_limit,
            single_buffer_weight=True,
        )
    except Exception:
        # Fallback for runtimes where Buffered(1) on a resident input is not
        # supported: default double buffering (costs one extra weight buffer).
        return _dbrx_router_pallas(
            hidden_states,
            w_t,
            num_experts=num_experts,
            tm=tm,
            vmem_limit=vmem_limit,
            single_buffer_weight=False,
        )


def dbrx_router(
    hidden_states: jax.Array,
    weight: jax.Array,
    *,
    compute_dtype=None,
    tm_max: int | None = None,
    min_pallas_tokens: int = 64,
) -> jax.Array:
    """DbrxRouter.forward: router logits (f32) per expert per token.

    hidden_states: [T, d_model]; weight: [num_experts, d_model] (Linear layout).
    For production, call prepare_router_weight once per layer and use
    dbrx_router_prepared directly (avoids re-running the transpose/pad/cast).
    """
    num_experts = weight.shape[0]
    w_t = prepare_router_weight(weight, compute_dtype)
    return dbrx_router_prepared(
        hidden_states,
        w_t,
        num_experts=num_experts,
        tm_max=tm_max,
        min_pallas_tokens=min_pallas_tokens,
    )


# --------------------------------------------------------------------------- #
# Self-test
# --------------------------------------------------------------------------- #
if __name__ == "__main__":
    # Small DBRX-ish config: d_model=32, moe_num_experts=8, 8 tokens.
    num_tokens = 8
    d_model = 32
    num_experts = 8

    key = jax.random.PRNGKey(0)
    k_x, k_w = jax.random.split(key)
    hidden_states = jax.random.normal(k_x, (num_tokens, d_model), jnp.float32)
    router_weight = jax.random.normal(k_w, (num_experts, d_model), jnp.float32) * (
        1.0 / jnp.sqrt(d_model)
    )

    # Host (numpy) reference; tolerances absorb MXU default-precision matmuls.
    ref_np = np.asarray(hidden_states) @ np.asarray(router_weight).T
    F32_TOL = dict(atol=2e-2, rtol=2e-2)
    BF16_TOL = dict(atol=1e-1, rtol=1e-1)

    # Weight prepared once (hoisted out of the per-call path) and reused.
    w_t_f32 = prepare_router_weight(router_weight)

    # 1) f32 Pallas path (forced via min_pallas_tokens=0), single block.
    logits = dbrx_router_prepared(
        hidden_states, w_t_f32, num_experts=num_experts, min_pallas_tokens=0
    )
    jax.block_until_ready(logits)
    assert logits.shape == (num_tokens, num_experts)
    assert logits.dtype == jnp.float32
    assert jnp.allclose(logits, ref_np, **F32_TOL)

    # 2) Ragged T=12 with tm=8 -> 2 grid steps, partial (masked) edge block.
    x12 = jax.random.normal(k_x, (12, d_model), jnp.float32)
    logits12 = dbrx_router_prepared(
        x12, w_t_f32, num_experts=num_experts, tm_max=8, min_pallas_tokens=0
    )
    jax.block_until_ready(logits12)
    assert logits12.shape == (12, num_experts)
    assert jnp.allclose(logits12, np.asarray(x12) @ np.asarray(router_weight).T, **F32_TOL)

    # 3) T=40 with tm=16 -> 3 grid steps, last block partially masked.
    x40 = jax.random.normal(k_w, (40, d_model), jnp.float32)
    logits40 = dbrx_router_prepared(
        x40, w_t_f32, num_experts=num_experts, tm_max=16, min_pallas_tokens=0
    )
    jax.block_until_ready(logits40)
    assert logits40.shape == (40, num_experts)
    assert jnp.allclose(logits40, np.asarray(x40) @ np.asarray(router_weight).T, **F32_TOL)

    # 4) Production-style bf16 compute path (in-kernel cast, f32 logits out).
    w_t_bf16 = prepare_router_weight(router_weight, jnp.bfloat16)
    logits_bf16 = dbrx_router_prepared(
        hidden_states, w_t_bf16, num_experts=num_experts, min_pallas_tokens=0
    )
    jax.block_until_ready(logits_bf16)
    assert logits_bf16.dtype == jnp.float32
    assert jnp.allclose(logits_bf16, ref_np, **BF16_TOL)

    # 5) Small-T decode fallback (default threshold): plain XLA dot.
    logits_small = dbrx_router(hidden_states, router_weight)
    jax.block_until_ready(logits_small)
    assert logits_small.shape == (num_tokens, num_experts)
    assert jnp.allclose(logits_small, ref_np, **F32_TOL)

    print("KERNEL_OK")
</pallas_src>

<mosaic_0001>
module attributes {stable_mosaic.version = 11 : i64} {
  func.func @_router_kernel(%arg0: i32, %arg1: memref<8x32xf32, #tpu.memory_space<vmem>>, %arg2: memref<32x128xf32, #tpu.memory_space<vmem>>, %arg3: memref<8x128xf32, #tpu.memory_space<vmem>>) attributes {dimension_semantics = [#tpu.dimension_semantics<parallel>], iteration_bounds = array<i64: 1>, scalar_prefetch = 0 : i64, scratch_operands = 0 : i64, tpu.core_type = #tpu.core_type<tc>, window_params = [{transform_indices = @transform_0, window_bounds = array<i64: 8, 32>}, {pipeline_mode = #tpu.pipeline_mode<synchronous>, transform_indices = @transform_1, window_bounds = array<i64: 32, 128>}, {transform_indices = @transform_2, window_bounds = array<i64: 8, 128>}]} {
    %c0 = arith.constant 0 : index
    %c0_0 = arith.constant 0 : index
    %0 = vector.load %arg1[%c0, %c0_0] : memref<8x32xf32, #tpu.memory_space<vmem>>, vector<8x32xf32>
    %c0_1 = arith.constant 0 : index
    %c0_2 = arith.constant 0 : index
    %1 = vector.load %arg2[%c0_1, %c0_2] : memref<32x128xf32, #tpu.memory_space<vmem>>, vector<32x128xf32>
    %cst = arith.constant dense<0.000000e+00> : vector<8x128xf32>
    %2 = tpu.matmul %0, %1, %cst {dimension_numbers = #tpu.dot_dimension_numbers<[1], [0], [0], [1], [0, 0, 1, 1], [], []>} : vector<8x32xf32>, vector<32x128xf32>, vector<8x128xf32> -> vector<8x128xf32>
    %c0_3 = arith.constant 0 : index
    %c0_4 = arith.constant 0 : index
    %3 = vector.load %arg3[%c0_3, %c0_4] : memref<8x128xf32, #tpu.memory_space<vmem>>, vector<8x128xf32>
    tpu.vector_store %arg3[%c0_3, %c0_4], %2 {strides = array<i32>} : memref<8x128xf32, #tpu.memory_space<vmem>>, vector<8x128xf32>,
    return
  }
  func.func @transform_0(%arg0: i32) -> (i32, i32) {
    %c0_i32 = arith.constant 0 : i32
    %c0_i32_0 = arith.constant 0 : i32
    return %arg0, %c0_i32 : i32, i32
  }
  func.func @transform_1(%arg0: i32) -> (i32, i32) {
    %c0_i32 = arith.constant 0 : i32
    %c0_i32_0 = arith.constant 0 : i32
    %c0_i32_1 = arith.constant 0 : i32
    return %c0_i32, %c0_i32_0 : i32, i32
  }
  func.func @transform_2(%arg0: i32) -> (i32, i32) {
    %c0_i32 = arith.constant 0 : i32
    %c0_i32_0 = arith.constant 0 : i32
    return %arg0, %c0_i32 : i32, i32
  }
}

module attributes {stable_mosaic.version = 11 : i64} {
  func.func @_router_kernel(%arg0: i32, %arg1: memref<8x32xf32, #tpu.memory_space<vmem>>, %arg2: memref<32x128xf32, #tpu.memory_space<vmem>>, %arg3: memref<8x128xf32, #tpu.memory_space<vmem>>) attributes {dimension_semantics = [#tpu.dimension_semantics<parallel>], iteration_bounds = array<i64: 1>, scalar_prefetch = 0 : i64, scratch_operands = 0 : i64, tpu.core_type = #tpu.core_type<tc>, window_params = [{transform_indices = @transform_0, window_bounds = array<i64: 8, 32>}, {pipeline_mode = #tpu.pipeline_mode<synchronous>, transform_indices = @transform_1, window_bounds = array<i64: 32, 128>}, {transform_indices = @transform_2, window_bounds = array<i64: 8, 128>}]} {
    %c0 = arith.constant 0 : index
    %c0_0 = arith.constant 0 : index
    %0 = vector.load %arg1[%c0, %c0_0] : memref<8x32xf32, #tpu.memory_space<vmem>>, vector<8x32xf32>
    %c0_1 = arith.constant 0 : index
    %c0_2 = arith.constant 0 : index
    %1 = vector.load %arg2[%c0_1, %c0_2] : memref<32x128xf32, #tpu.memory_space<vmem>>, vector<32x128xf32>
    %cst = arith.constant dense<0.000000e+00> : vector<8x128xf32>
    %2 = tpu.matmul %0, %1, %cst {dimension_numbers = #tpu.dot_dimension_numbers<[1], [0], [0], [1], [0, 0, 1, 1], [], []>} : vector<8x32xf32>, vector<32x128xf32>, vector<8x128xf32> -> vector<8x128xf32>
    %c0_3 = arith.constant 0 : index
    %c0_4 = arith.constant 0 : index
    %3 = vector.load %arg3[%c0_3, %c0_4] : memref<8x128xf32, #tpu.memory_space<vmem>>, vector<8x128xf32>
    tpu.vector_store %arg3[%c0_3, %c0_4], %2 {strides = array<i32>} : memref<8x128xf32, #tpu.memory_space<vmem>>, vector<8x128xf32>,
    return
  }
  func.func @transform_0(%arg0: i32) -> (i32, i32) {
    %c0_i32 = arith.constant 0 : i32
    %c0_i32_0 = arith.constant 0 : i32
    return %arg0, %c0_i32 : i32, i32
  }
  func.func @transform_1(%arg0: i32) -> (i32, i32) {
    %c0_i32 = arith.constant 0 : i32
    %c0_i32_0 = arith.constant 0 : i32
    %c0_i32_1 = arith.constant 0 : i32
    return %c0_i32, %c0_i32_0 : i32, i32
  }
  func.func @transform_2(%arg0: i32) -> (i32, i32) {
    %c0_i32 = arith.constant 0 : i32
    %c0_i32_0 = arith.constant 0 : i32
    return %arg0, %c0_i32 : i32, i32
  }
}

</mosaic_0001>

<bundles_post_ra>
// kernel: _dbrx_router_pallas.1
= control target key start
LH: loop header
LB: loop body
LE: loop exit
PB: predicated region body
PF: predicated region fallthrough
CT: control target
= control target key end

     0   :  { %7 = vsyncpa [#allocation3], 0  ;;  %s255_s0 = inlined_call_operand.hbm [shape: f32[8,32], index: 0, kind: input, shape index: {}]   ;;  %s256_s1 = inlined_call_operand.hbm [shape: f32[32,128], index: 1, kind: input, shape index: {}]   ;;  %s257_s2 = inlined_call_operand.hbm [shape: f32[8,128], index: 2, kind: output, shape index: {}]  }
   0x1   :  { %8 = vsyncpa [#allocation6], 0 }
   0x2   :  { %9 = vsyncpa [#allocation4], 0  ;;  %s224_s9 = smov [#allocation2]   ;;  %s225_s11 = smov [#allocation5]  }
   0x3   :  { %s16_s10 = sshll.u32 %s224_s9, 4  ;;  %s25_s12 = sshll.u32 %s225_s11, 4  ;;  %s17_s10 = int_to_ptr.vmem [resolvable:$true] %s16_s10  ;;  %s26_s12 = int_to_ptr.vmem [resolvable:$true] %s25_s12 }
   0x4   :  { %s166_s13 = scalar_lea.vmem %s17_s10, 128  ;;  %p171_p1 = scmp.lt.s32.totalorder %s17_s10, %s17_s10 }
   0x5   :  { %p167_p0 = scmp.ne.s32.totalorder %s17_s10, %s166_s13  ;;  %p172_p2 = scmp.lt.s32.totalorder %s166_s13, %s166_s13 }
   0x7   :  { %p173_p3 = por %p172_p2, %p171_p1 }
   0x9   :  { %p174_p4 = pnand %p173_p3, %p167_p0 }
   0xb   :  { %177 = shalt.err (!%p174_p4)
}
   0xc   :  { %19 = dma.hbm_to_vmem [thread:$0]  %s255_s0, 128, %s17_s10, [#allocation3]  }
   0xd   :  { %s186_s16 = scalar_lea.vmem %s26_s12, 512  ;;  %p191_p6 = scmp.lt.s32.totalorder %s26_s12, %s26_s12 }
   0xe   :  { %p187_p5 = scmp.ne.s32.totalorder %s26_s12, %s186_s16  ;;  %p192_p7 = scmp.lt.s32.totalorder %s186_s16, %s186_s16 }
  0x10   :  { %p193_p8 = por %p192_p7, %p191_p6 }
  0x12   :  { %p194_p9 = pnand %p193_p8, %p187_p5 }
  0x14   :  { %197 = shalt.err (!%p194_p9)
}
  0x15   :  { %s226_s17 = smov 128   ;;  %s227_s18 = smov 8  }
  0x16   :  { %31 = dma.hbm_to_vmem [thread:$0]  %s256_s1, 512, %s26_s12, [#allocation6], %s226_s17, %s226_s17, %s227_s18  }
  0x17   :  { %218 = dma.done.wait [#allocation3], 128  }
  0x18   :  { %219 = vsyncadd [#allocation3], 4294967168 }
  0x19   :  { %220 = dma.done.wait [#allocation6], 512  }
  0x1a   :  { %221 = vsyncadd [#allocation6], 4294966784  ;;  %v228_v0 = vmov 0.0   ;;  %vm229_vm0 = vmmov 0   ;;  %v42_v1 = vld [vmem:[#allocation5 + $0x18] sm:$0xff]  ;;  %v41_v2 = vld [vmem:[#allocation5 + $0x10] sm:$0xff] }
  0x1b   :  { %140 = vmatprep.subr.mxu0 %v228_v0  ;;  %148 = vmatprep.mubr.msk.f32.mxu0 %vm229_vm0, %v228_v0  ;;  %v40_v3 = vld [vmem:[#allocation5 + $0x8] sm:$0xff]  ;;  %v39_v4 = vld [vmem:[#allocation5] sm:$0xff]  ;;  %v38_v5 = vld [vmem:[#allocation2] sm:$0xff]  ;;  %vm43_vm1 = vcmask 261120   ;;  %s230_s0 = smov [#allocation7]  }
  0x1c   :  { %141 = vmatpush3.msra.mxu0 %v42_v1  ;;  %s124_s1 = sshll.u32 %s230_s0, 4  ;;  %s125_s1 = int_to_ptr.vmem [resolvable:$true] %s124_s1 }
  0x1d   :  { %142 = vmatprep.subr.mxu0 %v228_v0  ;;  %s198_s21 = scalar_lea.vmem %s125_s1, 128  ;;  %p203_p11 = scmp.lt.s32.totalorder %s125_s1, %s125_s1 }
  0x1e   :  { %143 = vmatpush3.msra.mxu0 %v41_v2  ;;  %p199_p10 = scmp.ne.s32.totalorder %s125_s1, %s198_s21  ;;  %p204_p12 = scmp.lt.s32.totalorder %s198_s21, %s198_s21 }
  0x1f   :  { %144 = vmatprep.subr.mxu0 %v228_v0 }
  0x20   :  { %145 = vmatpush3.msra.mxu0 %v40_v3  ;;  %p205_p13 = por %p204_p12, %p203_p11 }
  0x21   :  { %146 = vmatprep.subr.mxu0 %v228_v0 }
  0x22   :  { %147 = vmatpush3.msra.mxu0 %v39_v4  ;;  %p206_p0 = pnand %p205_p13, %p199_p10 }
  0x23   :  { %149 = vmatmul.mubr.msk.f32.vlgmr.msra.gmra.mxu0 %vm43_vm1, %v38_v5 }
  0xe3   :  { %v113_v6 = vpop.f32.mrf.mxu0 }
  0xe4   :  { %117 = vst [vmem:[#allocation7] sm:$0xff] %v113_v6 }
  0xe5   :  { %v150_v7 = vpop.f32.mrf.mxu0 }
  0xe6   :  { %209 = shalt.err (!%p206_p0)
}
  0xe7   :  { %127 = dma.vmem_to_hbm [thread:$0]  %s125_s1, 128, %s257_s2, [#allocation4]  }
  0xe8   :  { %222 = dma.done.wait [#allocation4], 128  }
  0xe9   :  { %223 = vsyncadd [#allocation4], 4294967168 }
  0xea   :  { %131 = vsyncpa [#allocation3], 1 }
  0xeb   :  { %132 = vsyncpa [#allocation6], 1 }
  0xec   :  { %133 = vsyncpa [#allocation4], 1 }

// kernel: _dbrx_router_pallas.1
= control target key start
LH: loop header
LB: loop body
LE: loop exit
PB: predicated region body
PF: predicated region fallthrough
CT: control target
= control target key end

     0   :  { %7 = vsyncpa [#allocation3], 0  ;;  %s255_s0 = inlined_call_operand.hbm [shape: f32[8,32], index: 0, kind: input, shape index: {}]   ;;  %s256_s1 = inlined_call_operand.hbm [shape: f32[32,128], index: 1, kind: input, shape index: {}]   ;;  %s257_s2 = inlined_call_operand.hbm [shape: f32[8,128], index: 2, kind: output, shape index: {}]  }
   0x1   :  { %8 = vsyncpa [#allocation6], 0 }
   0x2   :  { %9 = vsyncpa [#allocation4], 0  ;;  %s224_s9 = smov [#allocation2]   ;;  %s225_s11 = smov [#allocation5]  }
   0x3   :  { %s16_s10 = sshll.u32 %s224_s9, 4  ;;  %s25_s12 = sshll.u32 %s225_s11, 4  ;;  %s17_s10 = int_to_ptr.vmem [resolvable:$true] %s16_s10  ;;  %s26_s12 = int_to_ptr.vmem [resolvable:$true] %s25_s12 }
   0x4   :  { %s166_s13 = scalar_lea.vmem %s17_s10, 128  ;;  %p171_p1 = scmp.lt.s32.totalorder %s17_s10, %s17_s10 }
   0x5   :  { %p167_p0 = scmp.ne.s32.totalorder %s17_s10, %s166_s13  ;;  %p172_p2 = scmp.lt.s32.totalorder %s166_s13, %s166_s13 }
   0x7   :  { %p173_p3 = por %p172_p2, %p171_p1 }
   0x9   :  { %p174_p4 = pnand %p173_p3, %p167_p0 }
   0xb   :  { %177 = shalt.err (!%p174_p4)
}
   0xc   :  { %19 = dma.hbm_to_vmem [thread:$0]  %s255_s0, 128, %s17_s10, [#allocation3]  }
   0xd   :  { %s186_s16 = scalar_lea.vmem %s26_s12, 512  ;;  %p191_p6 = scmp.lt.s32.totalorder %s26_s12, %s26_s12 }
   0xe   :  { %p187_p5 = scmp.ne.s32.totalorder %s26_s12, %s186_s16  ;;  %p192_p7 = scmp.lt.s32.totalorder %s186_s16, %s186_s16 }
  0x10   :  { %p193_p8 = por %p192_p7, %p191_p6 }
  0x12   :  { %p194_p9 = pnand %p193_p8, %p187_p5 }
  0x14   :  { %197 = shalt.err (!%p194_p9)
}
  0x15   :  { %s226_s17 = smov 128   ;;  %s227_s18 = smov 8  }
  0x16   :  { %31 = dma.hbm_to_vmem [thread:$0]  %s256_s1, 512, %s26_s12, [#allocation6], %s226_s17, %s226_s17, %s227_s18  }
  0x17   :  { %218 = dma.done.wait [#allocation3], 128  }
  0x18   :  { %219 = vsyncadd [#allocation3], 4294967168 }
  0x19   :  { %220 = dma.done.wait [#allocation6], 512  }
  0x1a   :  { %221 = vsyncadd [#allocation6], 4294966784  ;;  %v228_v0 = vmov 0.0   ;;  %vm229_vm0 = vmmov 0   ;;  %v42_v1 = vld [vmem:[#allocation5 + $0x18] sm:$0xff]  ;;  %v41_v2 = vld [vmem:[#allocation5 + $0x10] sm:$0xff] }
  0x1b   :  { %140 = vmatprep.subr.mxu0 %v228_v0  ;;  %148 = vmatprep.mubr.msk.f32.mxu0 %vm229_vm0, %v228_v0  ;;  %v40_v3 = vld [vmem:[#allocation5 + $0x8] sm:$0xff]  ;;  %v39_v4 = vld [vmem:[#allocation5] sm:$0xff]  ;;  %v38_v5 = vld [vmem:[#allocation2] sm:$0xff]  ;;  %vm43_vm1 = vcmask 261120   ;;  %s230_s0 = smov [#allocation7]  }
  0x1c   :  { %141 = vmatpush3.msra.mxu0 %v42_v1  ;;  %s124_s1 = sshll.u32 %s230_s0, 4  ;;  %s125_s1 = int_to_ptr.vmem [resolvable:$true] %s124_s1 }
  0x1d   :  { %142 = vmatprep.subr.mxu0 %v228_v0  ;;  %s198_s21 = scalar_lea.vmem %s125_s1, 128  ;;  %p203_p11 = scmp.lt.s32.totalorder %s125_s1, %s125_s1 }
  0x1e   :  { %143 = vmatpush3.msra.mxu0 %v41_v2  ;;  %p199_p10 = scmp.ne.s32.totalorder %s125_s1, %s198_s21  ;;  %p204_p12 = scmp.lt.s32.totalorder %s198_s21, %s198_s21 }
  0x1f   :  { %144 = vmatprep.subr.mxu0 %v228_v0 }
  0x20   :  { %145 = vmatpush3.msra.mxu0 %v40_v3  ;;  %p205_p13 = por %p204_p12, %p203_p11 }
  0x21   :  { %146 = vmatprep.subr.mxu0 %v228_v0 }
  0x22   :  { %147 = vmatpush3.msra.mxu0 %v39_v4  ;;  %p206_p0 = pnand %p205_p13, %p199_p10 }
  0x23   :  { %149 = vmatmul.mubr.msk.f32.vlgmr.msra.gmra.mxu0 %vm43_vm1, %v38_v5 }
  0xe3   :  { %v113_v6 = vpop.f32.mrf.mxu0 }
  0xe4   :  { %117 = vst [vmem:[#allocation7] sm:$0xff] %v113_v6 }
  0xe5   :  { %v150_v7 = vpop.f32.mrf.mxu0 }
  0xe6   :  { %209 = shalt.err (!%p206_p0)
}
  0xe7   :  { %127 = dma.vmem_to_hbm [thread:$0]  %s125_s1, 128, %s257_s2, [#allocation4]  }
  0xe8   :  { %222 = dma.done.wait [#allocation4], 128  }
  0xe9   :  { %223 = vsyncadd [#allocation4], 4294967168 }
  0xea   :  { %131 = vsyncpa [#allocation3], 1 }
  0xeb   :  { %132 = vsyncpa [#allocation6], 1 }
  0xec   :  { %133 = vsyncpa [#allocation4], 1 }

</bundles_post_ra>
